<compile_context>
chip_gen: v7x
topology: tpu7x:2x2x1
jax: 0.10.0
libtpu: 0.0.40
codegen_flags: <defaults>
</compile_context>

<pallas_src>
import jax
import jax.numpy as jnp
from jax.experimental import pallas as pl
from jax.experimental.pallas import tpu as pltpu

KPAD = 128  # lane width of the compact latent/head block (k=16 real lanes)


def _round_up(a, m):
    return (a + m - 1) // m * m


def _sigmoid(x):
    # sigmoid via tanh identity: 1 EUP op/elem instead of exp + reciprocal.
    return 0.5 * (jnp.tanh(0.5 * x) + 1.0)


def vae_kernel(x_ref, w1_ref, b1_ref, wh_ref, bh_ref, msel_ref, esel_ref,
               wd1_ref, bd1_ref, wd2_ref, bd2_ref,
               out_ref, heads_ref):
    f32, bf16 = jnp.float32, jnp.bfloat16

    # ---- encoder trunk: relu(x @ W1 + b1)  (bf16 MXU operands, f32 accum) ----
    h = jnp.dot(x_ref[...], w1_ref[...], preferred_element_type=f32)
    h = jnp.maximum(h + b1_ref[...], 0.0)

    # ---- compact mean|logvar heads: lanes 0:k mean, k:2k logvar, rest 0 ----
    heads = jnp.dot(h.astype(bf16), wh_ref[...], preferred_element_type=f32)
    heads = jnp.maximum(heads + bh_ref[...], 0.0)
    heads_ref[...] = heads                  # single lane-dense (tm, 128) store

    # ---- reparameterization, no cross-lane shuffle needed ----
    #   zc lanes 0:k  = mean
    #   zc lanes k:2k = eps * exp(0.5 * logvar)
    #   zc lanes 2k:  = 0
    # wd1_dup has decoder_fc1.W at BOTH rows 0:k and k:2k (zeros elsewhere), so
    # zc @ wd1_dup == (mean + eps*std) @ decoder_fc1.W exactly.
    zc = msel_ref[...] * heads + esel_ref[...] * jnp.exp(0.5 * heads)

    # ---- decoder ----
    d1 = jnp.dot(zc.astype(bf16), wd1_ref[...], preferred_element_type=f32)
    d1 = _sigmoid(d1 + bd1_ref[...])
    d2 = jnp.dot(d1.astype(bf16), wd2_ref[...], preferred_element_type=f32)
    out_ref[...] = _sigmoid(d2 + bd2_ref[...])


def _vmem_budget_bytes(tm, dim_p, hidden):
    """Explicit scoped-VMEM budget (matters on v7x's 64 MiB once dims scale)."""
    w_bytes = 2 * (dim_p * hidden + hidden * KPAD + KPAD * hidden + hidden * dim_p)  # bf16
    b_bytes = 4 * (hidden + 4 * KPAD + hidden + dim_p)                               # f32
    tile_bytes = 2 * tm * dim_p + 4 * tm * dim_p + 4 * tm * KPAD   # x(bf16) + out + heads
    est = 4 * (w_bytes + b_bytes + 2 * tile_bytes)                 # 2x buffers + headroom
    return int(min(max(est, 32 << 20), 64 << 20))


def prepare_params(params):
    """One-time packing / padding / bf16 cast of the VAE weights for the kernel."""
    bf16 = jnp.bfloat16
    w1 = params["w1"]
    dim, hidden = w1.shape
    k = params["wm"].shape[1]
    dim_p = _round_up(dim, 128)

    # encoder trunk, rows padded to dim_p (matches zero-padded x columns)
    w1_p = jnp.zeros((dim_p, hidden), jnp.float32).at[:dim].set(w1)

    # fused mean|logvar head: one (hidden, 128) weight, mean cols 0:k, logvar k:2k
    wh = jnp.zeros((hidden, KPAD), jnp.float32)
    wh = wh.at[:, :k].set(params["wm"]).at[:, k:2 * k].set(params["wv"])
    bh = jnp.zeros((1, KPAD), jnp.float32)
    bh = bh.at[:, :k].set(params["bm"]).at[:, k:2 * k].set(params["bv"])

    # decoder fc1 with duplicated rows (see kernel comment); rows 2k: are zero
    wd1_dup = jnp.zeros((KPAD, hidden), jnp.float32)
    wd1_dup = wd1_dup.at[:k].set(params["wd1"]).at[k:2 * k].set(params["wd1"])

    # decoder fc2, output columns padded to dim_p (sliced off in the wrapper)
    wd2_p = jnp.zeros((hidden, dim_p), jnp.float32).at[:, :dim].set(params["wd2"])
    bd2_p = jnp.zeros((1, dim_p), jnp.float32).at[:, :dim].set(params["bd2"])

    # selector masks for the shuffle-free reparameterization
    msel = jnp.zeros((1, KPAD), jnp.float32).at[:, :k].set(1.0)

    return dict(
        dim=dim, dim_p=dim_p, hidden=hidden, k=k,   # static Python ints
        w1=w1_p.astype(bf16), b1=params["b1"],
        wh=wh.astype(bf16), bh=bh,
        wd1=wd1_dup.astype(bf16), bd1=params["bd1"],
        wd2=wd2_p.astype(bf16), bd2=bd2_p,
        msel=msel,
    )


def vae_forward(x_nchw, prep, eps, *, tm=None):
    """x_nchw: [B, C, H, W] float32.  Returns (decoder_out, mean, log_variance)."""
    B = x_nchw.shape[0]
    x = x_nchw.reshape(B, -1)               # == squeeze() + view(B, -1)
    dim, dim_p = prep["dim"], prep["dim_p"]
    hidden, k = prep["hidden"], prep["k"]
    assert x.shape[1] == dim

    # eps is fresh noise per call -> padded per call (tiny); weights are prepacked.
    # TODO(synk): use pltpu.prng_* for in-kernel per-row noise if ever wanted.
    esel = jnp.zeros((1, KPAD), jnp.float32).at[:, k:2 * k].set(eps)

    # batch tile: multiple of 16 (bf16 sublane tile), >=2 grid steps when B
    # allows so ("parallel",) shards over v7x's 2 TensorCores; cap 512.
    if tm is None:
        tm = min(_round_up((B + 1) // 2, 16), 512)
    else:
        tm = _round_up(tm, 16)
    B_pad = _round_up(B, tm)
    grid = (B_pad // tm,)

    # pad batch + feature dim once; cast the activation operand to bf16 once
    xp = jnp.pad(x, ((0, B_pad - B), (0, dim_p - dim))).astype(jnp.bfloat16)

    in_specs = [
        pl.BlockSpec((tm, dim_p), lambda i: (i, 0)),          # x  (batch-tiled, bf16)
        pl.BlockSpec((dim_p, hidden), lambda i: (0, 0)),      # w1 (resident)
        pl.BlockSpec((1, hidden), lambda i: (0, 0)),          # b1
        pl.BlockSpec((hidden, KPAD), lambda i: (0, 0)),       # wh (fused heads)
        pl.BlockSpec((1, KPAD), lambda i: (0, 0)),            # bh
        pl.BlockSpec((1, KPAD), lambda i: (0, 0)),            # msel
        pl.BlockSpec((1, KPAD), lambda i: (0, 0)),            # esel (eps)
        pl.BlockSpec((KPAD, hidden), lambda i: (0, 0)),       # wd1 (dup rows)
        pl.BlockSpec((1, hidden), lambda i: (0, 0)),          # bd1
        pl.BlockSpec((hidden, dim_p), lambda i: (0, 0)),      # wd2 (padded cols)
        pl.BlockSpec((1, dim_p), lambda i: (0, 0)),           # bd2
    ]
    out_specs = (
        pl.BlockSpec((tm, dim_p), lambda i: (i, 0)),          # decoder out
        pl.BlockSpec((tm, KPAD), lambda i: (i, 0)),           # compact heads out
    )
    out_shapes = (
        jax.ShapeDtypeStruct((B_pad, dim_p), jnp.float32),
        jax.ShapeDtypeStruct((B_pad, KPAD), jnp.float32),
    )

    out, heads = pl.pallas_call(
        vae_kernel,
        out_shape=out_shapes,
        grid=grid,
        in_specs=in_specs,
        out_specs=out_specs,
        compiler_params=pltpu.CompilerParams(
            dimension_semantics=("parallel",),   # shards batch tiles over v7x's 2 TCs
            vmem_limit_bytes=_vmem_budget_bytes(tm, dim_p, hidden),
        ),
    )(xp, prep["w1"], prep["b1"], prep["wh"], prep["bh"], prep["msel"], esel,
      prep["wd1"], prep["bd1"], prep["wd2"], prep["bd2"])

    decoder_out = out[:B, :dim]
    mean = heads[:B, :k]
    log_variance = heads[:B, k:2 * k]
    return decoder_out, mean, log_variance


def init_params(key, dim, k, hidden=256):
    """PyTorch-Linear-style init: U(-1/sqrt(fan_in), 1/sqrt(fan_in)).
    Weights stored as (in_features, out_features)."""
    def linear(key, fan_in, fan_out):
        kw, kb = jax.random.split(key)
        bound = 1.0 / jnp.sqrt(fan_in)
        w = jax.random.uniform(kw, (fan_in, fan_out), jnp.float32, -bound, bound)
        b = jax.random.uniform(kb, (1, fan_out), jnp.float32, -bound, bound)
        return w, b

    keys = jax.random.split(key, 5)
    w1, b1 = linear(keys[0], dim, hidden)        # encoder_fc1
    wm, bm = linear(keys[1], hidden, k)          # encoder_mean
    wv, bv = linear(keys[2], hidden, k)          # encoder_var
    wd1, bd1 = linear(keys[3], k, hidden)        # decoder_fc1
    wd2, bd2 = linear(keys[4], hidden, dim)      # decoder_fc2
    return dict(w1=w1, b1=b1, wm=wm, bm=bm, wv=wv, bv=bv,
                wd1=wd1, bd1=bd1, wd2=wd2, bd2=bd2)


def vae_reference(x_nchw, params, eps):
    """Pure-JAX f32 reference (mirrors the PyTorch module exactly)."""
    B = x_nchw.shape[0]
    x = x_nchw.reshape(B, -1)
    h = jnp.maximum(x @ params["w1"] + params["b1"], 0.0)
    mean = jnp.maximum(h @ params["wm"] + params["bm"], 0.0)
    logvar = jnp.maximum(h @ params["wv"] + params["bv"], 0.0)
    z = mean + eps * jnp.exp(0.5 * logvar)
    d1 = jax.nn.sigmoid(z @ params["wd1"] + params["bd1"])
    out = jax.nn.sigmoid(d1 @ params["wd2"] + params["bd2"])
    return out, mean, logvar


if __name__ == "__main__":
    B, C, H, W = 8, 1, 16, 16
    k = 16
    dim = C * H * W  # 256, matches squeeze() + view(B, -1)

    root = jax.random.PRNGKey(0)
    k_x, k_p, k_eps = jax.random.split(root, 3)

    x = jax.random.uniform(k_x, (B, C, H, W), jnp.float32)
    params = init_params(k_p, dim, k)
    eps = jax.random.normal(k_eps, (1, k), jnp.float32)  # torch.normal(0,1,size=(1,k))

    prep = prepare_params(params)                 # one-time packing / bf16 cast
    dec_out, mean, logvar = vae_forward(x, prep, eps)
    jax.block_until_ready((dec_out, mean, logvar))

    # correctness check vs pure-f32 reference (kernel uses bf16 MXU operands
    # with f32 accumulation, so tolerance is loosened accordingly)
    ref_out, ref_mean, ref_lv = vae_reference(x, params, eps)
    assert dec_out.shape == (B, dim) and mean.shape == (B, k) and logvar.shape == (B, k)
    assert jnp.allclose(dec_out, ref_out, atol=2e-2), float(jnp.max(jnp.abs(dec_out - ref_out)))
    assert jnp.allclose(mean, ref_mean, atol=2e-2), float(jnp.max(jnp.abs(mean - ref_mean)))
    assert jnp.allclose(logvar, ref_lv, atol=2e-2), float(jnp.max(jnp.abs(logvar - ref_lv)))

    print("KERNEL_OK")
</pallas_src>

<mosaic_0001>
module attributes {stable_mosaic.version = 11 : i64} {
  func.func @vae_kernel(%arg0: i32, %arg1: memref<16x256xbf16, #tpu.memory_space<vmem>>, %arg2: memref<256x256xbf16, #tpu.memory_space<vmem>>, %arg3: memref<1x256xf32, #tpu.memory_space<vmem>>, %arg4: memref<256x128xbf16, #tpu.memory_space<vmem>>, %arg5: memref<1x128xf32, #tpu.memory_space<vmem>>, %arg6: memref<1x128xf32, #tpu.memory_space<vmem>>, %arg7: memref<1x128xf32, #tpu.memory_space<vmem>>, %arg8: memref<128x256xbf16, #tpu.memory_space<vmem>>, %arg9: memref<1x256xf32, #tpu.memory_space<vmem>>, %arg10: memref<256x256xbf16, #tpu.memory_space<vmem>>, %arg11: memref<1x256xf32, #tpu.memory_space<vmem>>, %arg12: memref<16x256xf32, #tpu.memory_space<vmem>>, %arg13: memref<16x128xf32, #tpu.memory_space<vmem>>) attributes {dimension_semantics = [#tpu.dimension_semantics<parallel>], iteration_bounds = array<i64: 1>, scalar_prefetch = 0 : i64, scratch_operands = 0 : i64, tpu.core_type = #tpu.core_type<tc>, window_params = [{transform_indices = @transform_0, window_bounds = array<i64: 16, 256>}, {pipeline_mode = #tpu.pipeline_mode<synchronous>, transform_indices = @transform_1, window_bounds = array<i64: 256, 256>}, {pipeline_mode = #tpu.pipeline_mode<synchronous>, transform_indices = @transform_2, window_bounds = array<i64: 1, 256>}, {pipeline_mode = #tpu.pipeline_mode<synchronous>, transform_indices = @transform_3, window_bounds = array<i64: 256, 128>}, {pipeline_mode = #tpu.pipeline_mode<synchronous>, transform_indices = @transform_4, window_bounds = array<i64: 1, 128>}, {pipeline_mode = #tpu.pipeline_mode<synchronous>, transform_indices = @transform_5, window_bounds = array<i64: 1, 128>}, {pipeline_mode = #tpu.pipeline_mode<synchronous>, transform_indices = @transform_6, window_bounds = array<i64: 1, 128>}, {pipeline_mode = #tpu.pipeline_mode<synchronous>, transform_indices = @transform_7, window_bounds = array<i64: 128, 256>}, {pipeline_mode = #tpu.pipeline_mode<synchronous>, transform_indices = @transform_8, window_bounds = array<i64: 1, 256>}, {pipeline_mode = #tpu.pipeline_mode<synchronous>, transform_indices = @transform_9, window_bounds = array<i64: 256, 256>}, {pipeline_mode = #tpu.pipeline_mode<synchronous>, transform_indices = @transform_10, window_bounds = array<i64: 1, 256>}, {transform_indices = @transform_11, window_bounds = array<i64: 16, 256>}, {transform_indices = @transform_12, window_bounds = array<i64: 16, 128>}]} {
    %c0 = arith.constant 0 : index
    %c0_0 = arith.constant 0 : index
    %0 = vector.load %arg1[%c0, %c0_0] : memref<16x256xbf16, #tpu.memory_space<vmem>>, vector<16x256xbf16>
    %c0_1 = arith.constant 0 : index
    %c0_2 = arith.constant 0 : index
    %1 = vector.load %arg2[%c0_1, %c0_2] : memref<256x256xbf16, #tpu.memory_space<vmem>>, vector<256x256xbf16>
    %cst = arith.constant dense<0.000000e+00> : vector<16x256xf32>
    %2 = tpu.matmul %0, %1, %cst {dimension_numbers = #tpu.dot_dimension_numbers<[1], [0], [0], [1], [0, 0, 1, 1], [], []>} : vector<16x256xbf16>, vector<256x256xbf16>, vector<16x256xf32> -> vector<16x256xf32>
    %c0_3 = arith.constant 0 : index
    %c0_4 = arith.constant 0 : index
    %3 = vector.load %arg3[%c0_3, %c0_4] : memref<1x256xf32, #tpu.memory_space<vmem>>, vector<1x256xf32>
    %4 = vector.broadcast %3 : vector<1x256xf32> to vector<16x256xf32>
    %5 = arith.addf %2, %4 : vector<16x256xf32>
    %cst_5 = arith.constant 0.000000e+00 : f32
    %6 = vector.broadcast %cst_5 : f32 to vector<16x256xf32>
    %7 = arith.maximumf %5, %6 : vector<16x256xf32>
    %8 = arith.truncf %7 : vector<16x256xf32> to vector<16x256xbf16>
    %c0_6 = arith.constant 0 : index
    %c0_7 = arith.constant 0 : index
    %9 = vector.load %arg4[%c0_6, %c0_7] : memref<256x128xbf16, #tpu.memory_space<vmem>>, vector<256x128xbf16>
    %cst_8 = arith.constant dense<0.000000e+00> : vector<16x128xf32>
    %10 = tpu.matmul %8, %9, %cst_8 {dimension_numbers = #tpu.dot_dimension_numbers<[1], [0], [0], [1], [0, 0, 1, 1], [], []>} : vector<16x256xbf16>, vector<256x128xbf16>, vector<16x128xf32> -> vector<16x128xf32>
    %c0_9 = arith.constant 0 : index
    %c0_10 = arith.constant 0 : index
    %11 = vector.load %arg5[%c0_9, %c0_10] : memref<1x128xf32, #tpu.memory_space<vmem>>, vector<1x128xf32>
    %12 = vector.broadcast %11 : vector<1x128xf32> to vector<16x128xf32>
    %13 = arith.addf %10, %12 : vector<16x128xf32>
    %cst_11 = arith.constant 0.000000e+00 : f32
    %14 = vector.broadcast %cst_11 : f32 to vector<16x128xf32>
    %15 = arith.maximumf %13, %14 : vector<16x128xf32>
    %c0_12 = arith.constant 0 : index
    %c0_13 = arith.constant 0 : index
    %16 = vector.load %arg13[%c0_12, %c0_13] : memref<16x128xf32, #tpu.memory_space<vmem>>, vector<16x128xf32>
    tpu.vector_store %arg13[%c0_12, %c0_13], %15 {strides = array<i32>} : memref<16x128xf32, #tpu.memory_space<vmem>>, vector<16x128xf32>,
    %c0_14 = arith.constant 0 : index
    %c0_15 = arith.constant 0 : index
    %17 = vector.load %arg6[%c0_14, %c0_15] : memref<1x128xf32, #tpu.memory_space<vmem>>, vector<1x128xf32>
    %18 = vector.broadcast %17 : vector<1x128xf32> to vector<16x128xf32>
    %19 = arith.mulf %18, %15 : vector<16x128xf32>
    %c0_16 = arith.constant 0 : index
    %c0_17 = arith.constant 0 : index
    %20 = vector.load %arg7[%c0_16, %c0_17] : memref<1x128xf32, #tpu.memory_space<vmem>>, vector<1x128xf32>
    %cst_18 = arith.constant 5.000000e-01 : f32
    %21 = vector.broadcast %cst_18 : f32 to vector<16x128xf32>
    %22 = arith.mulf %21, %15 : vector<16x128xf32>
    %23 = math.exp %22 : vector<16x128xf32>
    %24 = vector.broadcast %20 : vector<1x128xf32> to vector<16x128xf32>
    %25 = arith.mulf %24, %23 : vector<16x128xf32>
    %26 = arith.addf %19, %25 : vector<16x128xf32>
    %27 = arith.truncf %26 : vector<16x128xf32> to vector<16x128xbf16>
    %c0_19 = arith.constant 0 : index
    %c0_20 = arith.constant 0 : index
    %28 = vector.load %arg8[%c0_19, %c0_20] : memref<128x256xbf16, #tpu.memory_space<vmem>>, vector<128x256xbf16>
    %cst_21 = arith.constant dense<0.000000e+00> : vector<16x256xf32>
    %29 = tpu.matmul %27, %28, %cst_21 {dimension_numbers = #tpu.dot_dimension_numbers<[1], [0], [0], [1], [0, 0, 1, 1], [], []>} : vector<16x128xbf16>, vector<128x256xbf16>, vector<16x256xf32> -> vector<16x256xf32>
    %c0_22 = arith.constant 0 : index
    %c0_23 = arith.constant 0 : index
    %30 = vector.load %arg9[%c0_22, %c0_23] : memref<1x256xf32, #tpu.memory_space<vmem>>, vector<1x256xf32>
    %31 = vector.broadcast %30 : vector<1x256xf32> to vector<16x256xf32>
    %32 = arith.addf %29, %31 : vector<16x256xf32>
    %cst_24 = arith.constant 5.000000e-01 : f32
    %33 = vector.broadcast %cst_24 : f32 to vector<16x256xf32>
    %34 = arith.mulf %33, %32 : vector<16x256xf32>
    %35 = math.tanh %34 : vector<16x256xf32>
    %cst_25 = arith.constant 1.000000e+00 : f32
    %36 = vector.broadcast %cst_25 : f32 to vector<16x256xf32>
    %37 = arith.addf %35, %36 : vector<16x256xf32>
    %cst_26 = arith.constant 5.000000e-01 : f32
    %38 = vector.broadcast %cst_26 : f32 to vector<16x256xf32>
    %39 = arith.mulf %38, %37 : vector<16x256xf32>
    %40 = arith.truncf %39 : vector<16x256xf32> to vector<16x256xbf16>
    %c0_27 = arith.constant 0 : index
    %c0_28 = arith.constant 0 : index
    %41 = vector.load %arg10[%c0_27, %c0_28] : memref<256x256xbf16, #tpu.memory_space<vmem>>, vector<256x256xbf16>
    %cst_29 = arith.constant dense<0.000000e+00> : vector<16x256xf32>
    %42 = tpu.matmul %40, %41, %cst_29 {dimension_numbers = #tpu.dot_dimension_numbers<[1], [0], [0], [1], [0, 0, 1, 1], [], []>} : vector<16x256xbf16>, vector<256x256xbf16>, vector<16x256xf32> -> vector<16x256xf32>
    %c0_30 = arith.constant 0 : index
    %c0_31 = arith.constant 0 : index
    %43 = vector.load %arg11[%c0_30, %c0_31] : memref<1x256xf32, #tpu.memory_space<vmem>>, vector<1x256xf32>
    %44 = vector.broadcast %43 : vector<1x256xf32> to vector<16x256xf32>
    %45 = arith.addf %42, %44 : vector<16x256xf32>
    %cst_32 = arith.constant 5.000000e-01 : f32
    %46 = vector.broadcast %cst_32 : f32 to vector<16x256xf32>
    %47 = arith.mulf %46, %45 : vector<16x256xf32>
    %48 = math.tanh %47 : vector<16x256xf32>
    %cst_33 = arith.constant 1.000000e+00 : f32
    %49 = vector.broadcast %cst_33 : f32 to vector<16x256xf32>
    %50 = arith.addf %48, %49 : vector<16x256xf32>
    %cst_34 = arith.constant 5.000000e-01 : f32
    %51 = vector.broadcast %cst_34 : f32 to vector<16x256xf32>
    %52 = arith.mulf %51, %50 : vector<16x256xf32>
    %c0_35 = arith.constant 0 : index
    %c0_36 = arith.constant 0 : index
    %53 = vector.load %arg12[%c0_35, %c0_36] : memref<16x256xf32, #tpu.memory_space<vmem>>, vector<16x256xf32>
    tpu.vector_store %arg12[%c0_35, %c0_36], %52 {strides = array<i32>} : memref<16x256xf32, #tpu.memory_space<vmem>>, vector<16x256xf32>,
    return
  }
  func.func @transform_0(%arg0: i32) -> (i32, i32) {
    %c0_i32 = arith.constant 0 : i32
    %c0_i32_0 = arith.constant 0 : i32
    return %arg0, %c0_i32 : i32, i32
  }
  func.func @transform_1(%arg0: i32) -> (i32, i32) {
    %c0_i32 = arith.constant 0 : i32
    %c0_i32_0 = arith.constant 0 : i32
    %c0_i32_1 = arith.constant 0 : i32
    return %c0_i32, %c0_i32_0 : i32, i32
  }
  func.func @transform_2(%arg0: i32) -> (i32, i32) {
    %c0_i32 = arith.constant 0 : i32
    %c0_i32_0 = arith.constant 0 : i32
    %c0_i32_1 = arith.constant 0 : i32
    return %c0_i32, %c0_i32_0 : i32, i32
  }
  func.func @transform_3(%arg0: i32) -> (i32, i32) {
    %c0_i32 = arith.constant 0 : i32
    %c0_i32_0 = arith.constant 0 : i32
    %c0_i32_1 = arith.constant 0 : i32
    return %c0_i32, %c0_i32_0 : i32, i32
  }
  func.func @transform_4(%arg0: i32) -> (i32, i32) {
    %c0_i32 = arith.constant 0 : i32
    %c0_i32_0 = arith.constant 0 : i32
    %c0_i32_1 = arith.constant 0 : i32
    return %c0_i32, %c0_i32_0 : i32, i32
  }
  func.func @transform_5(%arg0: i32) -> (i32, i32) {
    %c0_i32 = arith.constant 0 : i32
    %c0_i32_0 = arith.constant 0 : i32
    %c0_i32_1 = arith.constant 0 : i32
    return %c0_i32, %c0_i32_0 : i32, i32
  }
  func.func @transform_6(%arg0: i32) -> (i32, i32) {
    %c0_i32 = arith.constant 0 : i32
    %c0_i32_0 = arith.constant 0 : i32
    %c0_i32_1 = arith.constant 0 : i32
    return %c0_i32, %c0_i32_0 : i32, i32
  }
  func.func @transform_7(%arg0: i32) -> (i32, i32) {
    %c0_i32 = arith.constant 0 : i32
    %c0_i32_0 = arith.constant 0 : i32
    %c0_i32_1 = arith.constant 0 : i32
    return %c0_i32, %c0_i32_0 : i32, i32
  }
  func.func @transform_8(%arg0: i32) -> (i32, i32) {
    %c0_i32 = arith.constant 0 : i32
    %c0_i32_0 = arith.constant 0 : i32
    %c0_i32_1 = arith.constant 0 : i32
    return %c0_i32, %c0_i32_0 : i32, i32
  }
  func.func @transform_9(%arg0: i32) -> (i32, i32) {
    %c0_i32 = arith.constant 0 : i32
    %c0_i32_0 = arith.constant 0 : i32
    %c0_i32_1 = arith.constant 0 : i32
    return %c0_i32, %c0_i32_0 : i32, i32
  }
  func.func @transform_10(%arg0: i32) -> (i32, i32) {
    %c0_i32 = arith.constant 0 : i32
    %c0_i32_0 = arith.constant 0 : i32
    %c0_i32_1 = arith.constant 0 : i32
    return %c0_i32, %c0_i32_0 : i32, i32
  }
  func.func @transform_11(%arg0: i32) -> (i32, i32) {
    %c0_i32 = arith.constant 0 : i32
    %c0_i32_0 = arith.constant 0 : i32
    return %arg0, %c0_i32 : i32, i32
  }
  func.func @transform_12(%arg0: i32) -> (i32, i32) {
    %c0_i32 = arith.constant 0 : i32
    %c0_i32_0 = arith.constant 0 : i32
    return %arg0, %c0_i32 : i32, i32
  }
}

</mosaic_0001>

<bundles_post_ra>
// kernel: tpu_custom_call.1
= control target key start
LH: loop header
LB: loop body
LE: loop exit
PB: predicated region body
PF: predicated region fallthrough
CT: control target
= control target key end

     0   :  { %18 = vsyncpa [#allocation3], 0  ;;  %s1734_s0 = inlined_call_operand.hbm [shape: bf16[16,256], index: 0, kind: input, shape index: {}]   ;;  %s1735_s1 = inlined_call_operand.hbm [shape: bf16[256,256], index: 1, kind: input, shape index: {}]   ;;  %s1736_s2 = inlined_call_operand.vmem [shape: f32[1,256], index: 2, kind: input, shape index: {}]   ;;  %s1737_s3 = inlined_call_operand.hbm [shape: bf16[256,128], index: 3, kind: input, shape index: {}]   ;;  %s1738_s4 = inlined_call_operand.vmem [shape: f32[1,128], index: 4, kind: input, shape index: {}]   ;;  %s1739_s5 = inlined_call_operand.vmem [shape: f32[1,128], index: 5, kind: input, shape index: {}]   ;;  %s1740_s6 = inlined_call_operand.vmem [shape: f32[1,128], index: 6, kind: input, shape index: {}]   ;;  %s1741_s7 = inlined_call_operand.hbm [shape: bf16[128,256], index: 7, kind: input, shape index: {}]   ;;  %s1742_s8 = inlined_call_operand.vmem [shape: f32[1,256], index: 8, kind: input, shape index: {}]   ;;  %s1743_s9 = inlined_call_operand.hbm [shape: bf16[256,256], index: 9, kind: input, shape index: {}]   ;;  %s1744_s10 = inlined_call_operand.vmem [shape: f32[1,256], index: 10, kind: input, shape index: {}]   ;;  %s1745_s11 = inlined_call_operand.hbm [shape: f32[16,256], index: 11, kind: output, shape index: {0}]   ;;  %s1746_s12 = inlined_call_operand.hbm [shape: f32[16,128], index: 12, kind: output, shape index: {1}]  }
   0x1   :  { %19 = vsyncpa [#allocation6], 0 }
   0x2   :  { %20 = vsyncpa [#allocation9], 0 }
   0x3   :  { %21 = vsyncpa [#allocation4], 0 }
   0x4   :  { %22 = vsyncpa [#allocation13], 0  ;;  %s1514_s21 = smov [#allocation5]   ;;  %s1515_s23 = smov [#allocation8]  }
   0x5   :  { %s40_s22 = sshll.u32 %s1514_s21, 4  ;;  %s72_s24 = sshll.u32 %s1515_s23, 4  ;;  %s41_s22 = int_to_ptr.vmem [resolvable:$true] %s40_s22  ;;  %s1593_s24 = int_to_ptr.vmem [resolvable:$true] %s72_s24 }
   0x6   :  { %s1350_s27 = scalar_lea.hbm %s1735_s1, 4096 }
   0x7   :  { %p1351_p0 = scmp.ne.s32.totalorder %s1735_s1, %s1350_s27  ;;  %p1354_p1 = scmp.lt.u32.totalorder %s1350_s27, %s1735_s1 }
   0x9   :  { %p1356_p2 = pnand %p1354_p1, %p1351_p0 }
   0xb   :  { %1359 = shalt.err (!%p1356_p2)
}
   0xc   :  { %s1360_s14 = scalar_lea.vmem %s41_s22, 4096  ;;  %p1365_p4 = scmp.lt.s32.totalorder %s41_s22, %s41_s22 }
   0xd   :  { %p1361_p3 = scmp.ne.s32.totalorder %s41_s22, %s1360_s14  ;;  %p1366_p5 = scmp.lt.s32.totalorder %s1360_s14, %s1360_s14 }
   0xf   :  { %p1367_p6 = por %p1366_p5, %p1365_p4 }
  0x11   :  { %p1368_p7 = pnand %p1367_p6, %p1361_p3 }
  0x13   :  { %1371 = shalt.err (!%p1368_p7)
}
  0x14   :  { %s1516_s15 = smov 128   ;;  %s1517_s16 = smov 8  }
  0x15   :  { %46 = dma.hbm_to_vmem [thread:$0]  %s1735_s1, 4096, %s41_s22, [#allocation6], %s1516_s15, %s1516_s15, %s1517_s16  }
  0x16   :  { %s1372_s21 = scalar_lea.hbm %s1741_s7, 2048 }
  0x17   :  { %p1373_p8 = scmp.ne.s32.totalorder %s1741_s7, %s1372_s21  ;;  %p1376_p9 = scmp.lt.u32.totalorder %s1372_s21, %s1741_s7 }
  0x19   :  { %p1378_p10 = pnand %p1376_p9, %p1373_p8 }
  0x1b   :  { %1381 = shalt.err (!%p1378_p10)
}
  0x1c   :  { %s1382_s28 = scalar_lea.vmem %s1593_s24, 2048  ;;  %p1387_p12 = scmp.lt.s32.totalorder %s1593_s24, %s1593_s24 }
  0x1d   :  { %p1383_p11 = scmp.ne.s32.totalorder %s1593_s24, %s1382_s28  ;;  %p1388_p13 = scmp.lt.s32.totalorder %s1382_s28, %s1382_s28 }
  0x1f   :  { %p1389_p0 = por %p1388_p13, %p1387_p12 }
  0x21   :  { %p1390_p1 = pnand %p1389_p0, %p1383_p11 }
  0x23   :  { %1393 = shalt.err (!%p1390_p1)
}
  0x24   :  { %78 = dma.hbm_to_vmem [thread:$0]  %s1741_s7, 2048, %s1593_s24, [#allocation9], %s1516_s15, %s1516_s15, %s1517_s16  }
  0x25   :  { %s1518_s29 = smov [#allocation2]   ;;  %s1519_s13 = smov [#allocation7]  }
  0x26   :  { %s28_s30 = sshll.u32 %s1518_s29, 4  ;;  %s54_s14 = sshll.u32 %s1519_s13, 4  ;;  %s29_s30 = int_to_ptr.vmem [resolvable:$true] %s28_s30  ;;  %s1630_s14 = int_to_ptr.vmem [resolvable:$true] %s54_s14 }
  0x27   :  { %s1394_s19 = scalar_lea.hbm %s1734_s0, 256 }
  0x28   :  { %p1395_p2 = scmp.ne.s32.totalorder %s1734_s0, %s1394_s19  ;;  %p1398_p3 = scmp.lt.u32.totalorder %s1394_s19, %s1734_s0 }
  0x2a   :  { %p1400_p4 = pnand %p1398_p3, %p1395_p2 }
  0x2c   :  { %1403 = shalt.err (!%p1400_p4)
}
  0x2d   :  { %s1404_s7 = scalar_lea.vmem %s29_s30, 256  ;;  %p1409_p6 = scmp.lt.s32.totalorder %s29_s30, %s29_s30 }
  0x2e   :  { %p1405_p5 = scmp.ne.s32.totalorder %s29_s30, %s1404_s7  ;;  %p1410_p7 = scmp.lt.s32.totalorder %s1404_s7, %s1404_s7 }
  0x30   :  { %p1411_p8 = por %p1410_p7, %p1409_p6 }
  0x32   :  { %p1412_p9 = pnand %p1411_p8, %p1405_p5 }
  0x34   :  { %1415 = shalt.err (!%p1412_p9)
}
  0x35   :  { %34 = dma.hbm_to_vmem [thread:$0]  %s1734_s0, 256, %s29_s30, [#allocation3], %s1516_s15, %s1516_s15, %s1517_s16  }
  0x36   :  { %s1416_s1 = scalar_lea.hbm %s1737_s3, 2048 }
  0x37   :  { %p1417_p10 = scmp.ne.s32.totalorder %s1737_s3, %s1416_s1  ;;  %p1420_p11 = scmp.lt.u32.totalorder %s1416_s1, %s1737_s3 }
  0x39   :  { %p1422_p12 = pnand %p1420_p11, %p1417_p10 }
  0x3b   :  { %1425 = shalt.err (!%p1422_p12)
}
  0x3c   :  { %s1426_s18 = scalar_lea.vmem %s1630_s14, 2048  ;;  %p1431_p0 = scmp.lt.s32.totalorder %s1630_s14, %s1630_s14 }
  0x3d   :  { %p1427_p13 = scmp.ne.s32.totalorder %s1630_s14, %s1426_s18  ;;  %p1432_p1 = scmp.lt.s32.totalorder %s1426_s18, %s1426_s18 }
  0x3f   :  { %p1433_p2 = por %p1432_p1, %p1431_p0 }
  0x41   :  { %p1434_p3 = pnand %p1433_p2, %p1427_p13 }
  0x43   :  { %1437 = shalt.err (!%p1434_p3)
}
  0x44   :  { %s1520_s0 = smov 64   ;;  %s1521_s30 = smov 4  }
  0x45   :  { %60 = dma.hbm_to_vmem [thread:$0]  %s1737_s3, 2048, %s1630_s14, [#allocation6], %s1520_s0, %s1520_s0, %s1521_s30  }
  0x46   :  { %s1522_s21 = smov [#allocation10]   ;;  %s1438_s24 = scalar_lea.hbm %s1743_s9, 4096 }
  0x47   :  { %s86_s23 = sshll.u32 %s1522_s21, 4  ;;  %p1439_p4 = scmp.ne.s32.totalorder %s1743_s9, %s1438_s24  ;;  %s87_s23 = int_to_ptr.vmem [resolvable:$true] %s86_s23 }
  0x48   :  { %p1442_p5 = scmp.lt.u32.totalorder %s1438_s24, %s1743_s9 }
  0x4a   :  { %p1444_p6 = pnand %p1442_p5, %p1439_p4 }
  0x4c   :  { %1447 = shalt.err (!%p1444_p6)
}
  0x4d   :  { %s1448_s22 = scalar_lea.vmem %s87_s23, 4096  ;;  %p1453_p8 = scmp.lt.s32.totalorder %s87_s23, %s87_s23 }
  0x4e   :  { %p1449_p7 = scmp.ne.s32.totalorder %s87_s23, %s1448_s22  ;;  %p1454_p9 = scmp.lt.s32.totalorder %s1448_s22, %s1448_s22 }
  0x50   :  { %p1455_p10 = por %p1454_p9, %p1453_p8 }
  0x52   :  { %p1456_p11 = pnand %p1455_p10, %p1449_p7 }
  0x54   :  { %1459 = shalt.err (!%p1456_p11)
}
  0x55   :  { %92 = dma.hbm_to_vmem [thread:$0]  %s1743_s9, 4096, %s87_s23, [#allocation9], %s1516_s15, %s1516_s15, %s1517_s16  }
  0x56   :  { %1504 = dma.done.wait [#allocation3], 256  }
  0x57   :  { %1505 = vsyncadd [#allocation3], 4294967040 }
  0x58   :  { %1506 = dma.done.wait [#allocation6], 6144  }
  0x59   :  { %1507 = vsyncadd [#allocation6], 4294961152 }
  0x5a   :  { %1508 = dma.done.wait [#allocation9], 6144  }
  0x5b   :  { %1509 = vsyncadd [#allocation9], 4294961152  ;;  %v1191_v0 = vld [vmem:[#allocation5 + $0x4] ss:$8 sps:$4 sm:$0xff]   ;;  %v1193_v1 = vld [vmem:[#allocation5] ss:$8 sps:$4 sm:$0xff]   ;;  %v147_v51 = vlaneseq }
  0x5c   :  { %327 = vmatprep.subr.bf16.mxu0 %v1191_v0  ;;  %v1194_v2 = vld [vmem:[#allocation5 + $0x14] ss:$8 sps:$4 sm:$0xff]   ;;  %v1196_v3 = vld [vmem:[#allocation5 + $0x10] ss:$8 sps:$4 sm:$0xff]   ;;  %v1197_v4 = vld [vmem:[#allocation5 + $0x24] ss:$8 sps:$4 sm:$0xff]  }
  0x5d   :  { %328 = vmatpush1.bf16.msra.mxu0 %v1193_v1  ;;  %v1199_v5 = vld [vmem:[#allocation5 + $0x20] ss:$8 sps:$4 sm:$0xff]   ;;  %v1200_v6 = vld [vmem:[#allocation5 + $0x34] ss:$8 sps:$4 sm:$0xff]   ;;  %v1202_v7 = vld [vmem:[#allocation5 + $0x30] ss:$8 sps:$4 sm:$0xff]  }
  0x5e   :  { %329 = vmatprep.subr.bf16.mxu0 %v1194_v2  ;;  %v1203_v8 = vld [vmem:[#allocation5 + $0x44] ss:$8 sps:$4 sm:$0xff]   ;;  %v1205_v9 = vld [vmem:[#allocation5 + $0x40] ss:$8 sps:$4 sm:$0xff]   ;;  %v1206_v10 = vld [vmem:[#allocation5 + $0x54] ss:$8 sps:$4 sm:$0xff]  }
  0x5f   :  { %v1208_v11 = vld [vmem:[#allocation5 + $0x50] ss:$8 sps:$4 sm:$0xff]   ;;  %v1209_v12 = vld [vmem:[#allocation5 + $0x64] ss:$8 sps:$4 sm:$0xff]   ;;  %v1211_v13 = vld [vmem:[#allocation5 + $0x60] ss:$8 sps:$4 sm:$0xff]  }
  0x60   :  { %v1212_v14 = vld [vmem:[#allocation5 + $0x74] ss:$8 sps:$4 sm:$0xff]   ;;  %v1242_v16 = vld [vmem:[#allocation7 + $0x40] sm:$0xff]   ;;  %v1214_v18 = vld [vmem:[#allocation5 + $0x70] ss:$8 sps:$4 sm:$0xff]   ;;  %v148_v52 = vshrl.u32 %v147_v51, 7 }
  0x61   :  { %330 = vmatpush1.bf16.msra.mxu0 %v1196_v3  ;;  %v1241_v15 = vld [vmem:[#allocation2 + $0x4] ss:$8 sps:$4 sm:$0xff]   ;;  %v1243_v17 = vld [vmem:[#allocation7] sm:$0xff]   ;;  %1155 = vmatprep.subr.bf16.mxu1 %v1242_v16  ;;  %v1244_v19 = vld [vmem:[#allocation7 + $0x48] sm:$0xff]  }
  0x62   :  { %331 = vmatprep.subr.bf16.mxu0 %v1197_v4  ;;  %359 = vmatprep.mubr.bf16.mxu0 %v1241_v15  ;;  %v1245_v20 = vld [vmem:[#allocation7 + $0x8] sm:$0xff]   ;;  %v1246_v21 = vld [vmem:[#allocation7 + $0x50] sm:$0xff]   ;;  %v1248_v25 = vld [vmem:[#allocation7 + $0x58] sm:$0xff]   ;;  %v1679_v53 = vsub.s32 0, %v148_v52  ;;  %v1684_v55 = vsub.s32 1, %v148_v52 }
  0x63   :  { %1156 = vmatpush3.bf16.msra.mxu1 %v1243_v17  ;;  %v1215_v22 = vld [vmem:[#allocation5 + $0x84] ss:$8 sps:$4 sm:$0xff]   ;;  %v1217_v23 = vld [vmem:[#allocation5 + $0x80] ss:$8 sps:$4 sm:$0xff]   ;;  %v1247_v24 = vld [vmem:[#allocation7 + $0x10] sm:$0xff]  }
  0x64   :  { %1157 = vmatprep.subr.bf16.mxu1 %v1244_v19  ;;  %v1218_v26 = vld [vmem:[#allocation5 + $0x94] ss:$8 sps:$4 sm:$0xff]   ;;  %v1220_v27 = vld [vmem:[#allocation5 + $0x90] ss:$8 sps:$4 sm:$0xff]   ;;  %v1250_v29 = vld [vmem:[#allocation7 + $0x60] sm:$0xff]  }
  0x65   :  { %332 = vmatpush1.bf16.msra.mxu0 %v1199_v5  ;;  %v1249_v28 = vld [vmem:[#allocation7 + $0x18] sm:$0xff]   ;;  %v1221_v30 = vld [vmem:[#allocation5 + $0xa4] ss:$8 sps:$4 sm:$0xff]   ;;  %v1223_v32 = vld [vmem:[#allocation5 + $0xa0] ss:$8 sps:$4 sm:$0xff]  }
  0x66   :  { %333 = vmatprep.subr.bf16.mxu0 %v1200_v6  ;;  %v1251_v31 = vld [vmem:[#allocation7 + $0x20] sm:$0xff]   ;;  %v1252_v33 = vld [vmem:[#allocation7 + $0x68] sm:$0xff]   ;;  %v1224_v34 = vld [vmem:[#allocation5 + $0xb4] ss:$8 sps:$4 sm:$0xff]  }
  0x67   :  { %1158 = vmatpush3.bf16.msra.mxu1 %v1245_v20  ;;  %v1226_v35 = vld [vmem:[#allocation5 + $0xb0] ss:$8 sps:$4 sm:$0xff]   ;;  %v1227_v36 = vld [vmem:[#allocation5 + $0xc4] ss:$8 sps:$4 sm:$0xff]   ;;  %v1229_v37 = vld [vmem:[#allocation5 + $0xc0] ss:$8 sps:$4 sm:$0xff]  }
  0x68   :  { %1159 = vmatprep.subr.bf16.mxu1 %v1246_v21  ;;  %v1230_v38 = vld [vmem:[#allocation5 + $0xd4] ss:$8 sps:$4 sm:$0xff]   ;;  %v1232_v39 = vld [vmem:[#allocation5 + $0xd0] ss:$8 sps:$4 sm:$0xff]   ;;  %v1233_v40 = vld [vmem:[#allocation5 + $0xe4] ss:$8 sps:$4 sm:$0xff]  }
  0x69   :  { %334 = vmatpush1.bf16.msra.mxu0 %v1202_v7  ;;  %v1235_v41 = vld [vmem:[#allocation5 + $0xe0] ss:$8 sps:$4 sm:$0xff]   ;;  %v1236_v42 = vld [vmem:[#allocation5 + $0xf4] ss:$8 sps:$4 sm:$0xff]   ;;  %v1238_v43 = vld [vmem:[#allocation5 + $0xf0] ss:$8 sps:$4 sm:$0xff]  }
  0x6a   :  { %335 = vmatprep.subr.bf16.mxu0 %v1203_v8  ;;  %v1239_v44 = vld [vmem:[#allocation2] ss:$8 sps:$4 sm:$0xff]   ;;  %v1253_v45 = vld [vmem:[#allocation7 + $0x28] sm:$0xff]   ;;  %v1275_v17 = vld [vmem:[#allocation8 + $0x54] ss:$8 sps:$4 sm:$0xff]   ;;  %v1523_v20 = vmov 0  }
  0x6b   :  { %1160 = vmatpush3.bf16.msra.mxu1 %v1247_v24  ;;  %v1254_v46 = vld [vmem:[#allocation7 + $0x70] sm:$0xff]   ;;  %v1256_v48 = vld [vmem:[#allocation7 + $0x78] sm:$0xff]   ;;  %v1260_v50 = vld [vmem:[#allocation8 + $0x4] ss:$8 sps:$4 sm:$0xff]  }
  0x6c   :  { %1161 = vmatprep.subr.bf16.mxu1 %v1248_v25  ;;  %v1255_v47 = vld [vmem:[#allocation7 + $0x30] sm:$0xff]   ;;  %v1257_v49 = vld [vmem:[#allocation7 + $0x38] sm:$0xff]   ;;  %v1258_v8 = vld [vmem:[#allocation8] ss:$8 sps:$4 sm:$0xff]  }
  0x6d   :  { %336 = vmatpush1.bf16.msra.mxu0 %v1205_v9  ;;  %v145_v54 = vld [vmem:[%s1736_s2] sm:$0x3]  ;;  %v1263_v9 = vld [vmem:[#allocation8 + $0x14] ss:$8 sps:$4 sm:$0xff]   ;;  %v1272_v15 = vld [vmem:[#allocation8 + $0x44] ss:$8 sps:$4 sm:$0xff]  }
  0x6e   :  { %337 = vmatprep.subr.bf16.mxu0 %v1206_v10  ;;  %v150_v56 = vrot.slane %v145_v54, %v1679_v53  ;;  %v154_v57 = vrot.slane %v145_v54, %v1684_v55  ;;  %v1261_v10 = vld [vmem:[#allocation8 + $0x10] ss:$8 sps:$4 sm:$0xff]   ;;  %v1270_v16 = vld [vmem:[#allocation8 + $0x40] ss:$8 sps:$4 sm:$0xff]   ;;  %v1278_v19 = vld [vmem:[#allocation8 + $0x64] ss:$8 sps:$4 sm:$0xff]  }
  0x6f   :  { %1162 = vmatpush3.bf16.msra.mxu1 %v1249_v28  ;;  %v1276_v21 = vld [vmem:[#allocation8 + $0x60] ss:$8 sps:$4 sm:$0xff]   ;;  %v1284_v25 = vld [vmem:[#allocation10 + $0x4] ss:$8 sps:$4 sm:$0xff]  }
  0x70   :  { %1163 = vmatprep.subr.bf16.mxu1 %v1250_v29  ;;  %v1282_v24 = vld [vmem:[#allocation10] ss:$8 sps:$4 sm:$0xff]   ;;  %v1290_v28 = vld [vmem:[#allocation10 + $0x24] ss:$8 sps:$4 sm:$0xff]  }
  0x71   :  { %338 = vmatpush1.bf16.msra.mxu0 %v1208_v11  ;;  %v1266_v11 = vld [vmem:[#allocation8 + $0x24] ss:$8 sps:$4 sm:$0xff]   ;;  %v1288_v29 = vld [vmem:[#allocation10 + $0x20] ss:$8 sps:$4 sm:$0xff]  }
  0x72   :  { %339 = vmatprep.subr.bf16.mxu0 %v1209_v12  ;;  %v1264_v12 = vld [vmem:[#allocation8 + $0x20] ss:$8 sps:$4 sm:$0xff]  }
  0x73   :  { %1164 = vmatpush3.bf16.msra.mxu1 %v1251_v31  ;;  %v1291_v31 = vld [vmem:[#allocation10 + $0x30] ss:$8 sps:$4 sm:$0xff]  }
  0x74   :  { %1165 = vmatprep.subr.bf16.mxu1 %v1252_v33  ;;  %v1294_v33 = vld [vmem:[#allocation10 + $0x40] ss:$8 sps:$4 sm:$0xff]  }
  0x75   :  { %340 = vmatpush1.bf16.msra.mxu0 %v1211_v13  ;;  %v1269_v13 = vld [vmem:[#allocation8 + $0x34] ss:$8 sps:$4 sm:$0xff]  }
  0x76   :  { %341 = vmatprep.subr.bf16.mxu0 %v1212_v14  ;;  %v1267_v14 = vld [vmem:[#allocation8 + $0x30] ss:$8 sps:$4 sm:$0xff]  }
  0x77   :  { %1166 = vmatpush3.bf16.msra.mxu1 %v1253_v45  ;;  %v1088_v45 = vld [vmem:[%s1738_s4] ss:$0 sm:$0xff] }
  0x78   :  { %1167 = vmatprep.subr.bf16.mxu1 %v1254_v46 }
  0x79   :  { %342 = vmatpush1.bf16.msra.mxu0 %v1214_v18  ;;  %v1273_v18 = vld [vmem:[#allocation8 + $0x50] ss:$8 sps:$4 sm:$0xff]  }
  0x7a   :  { %343 = vmatprep.subr.bf16.mxu0 %v1215_v22  ;;  %v1281_v22 = vld [vmem:[#allocation8 + $0x74] ss:$8 sps:$4 sm:$0xff]  }
  0x7b   :  { %1168 = vmatpush3.bf16.msra.mxu1 %v1255_v47 }
  0x7c   :  { %1169 = vmatprep.subr.bf16.mxu1 %v1256_v48 }
  0x7d   :  { %344 = vmatpush1.bf16.msra.mxu0 %v1217_v23  ;;  %v1279_v23 = vld [vmem:[#allocation8 + $0x70] ss:$8 sps:$4 sm:$0xff]  }
  0x7e   :  { %345 = vmatprep.subr.bf16.mxu0 %v1218_v26  ;;  %v1287_v26 = vld [vmem:[#allocation10 + $0x14] ss:$8 sps:$4 sm:$0xff]  }
  0x7f   :  { %1170 = vmatpush3.bf16.msra.mxu1 %v1257_v49 }
  0x80   :  { %691 = vmatprep.subr.bf16.mxu1 %v1260_v50 }
  0x81   :  { %346 = vmatpush1.bf16.msra.mxu0 %v1220_v27  ;;  %v1285_v27 = vld [vmem:[#allocation10 + $0x10] ss:$8 sps:$4 sm:$0xff]  }
  0x82   :  { %347 = vmatprep.subr.bf16.mxu0 %v1221_v30  ;;  %v1293_v30 = vld [vmem:[#allocation10 + $0x34] ss:$8 sps:$4 sm:$0xff]  }
  0x85   :  { %348 = vmatpush1.bf16.msra.mxu0 %v1223_v32  ;;  %v1296_v32 = vld [vmem:[#allocation10 + $0x44] ss:$8 sps:$4 sm:$0xff]  }
  0x86   :  { %349 = vmatprep.subr.bf16.mxu0 %v1224_v34  ;;  %v1299_v34 = vld [vmem:[#allocation10 + $0x54] ss:$8 sps:$4 sm:$0xff]  }
  0x89   :  { %350 = vmatpush1.bf16.msra.mxu0 %v1226_v35  ;;  %v1297_v35 = vld [vmem:[#allocation10 + $0x50] ss:$8 sps:$4 sm:$0xff]  }
  0x8a   :  { %351 = vmatprep.subr.bf16.mxu0 %v1227_v36  ;;  %v1302_v36 = vld [vmem:[#allocation10 + $0x64] ss:$8 sps:$4 sm:$0xff]  }
  0x8d   :  { %352 = vmatpush1.bf16.msra.mxu0 %v1229_v37  ;;  %v1300_v37 = vld [vmem:[#allocation10 + $0x60] ss:$8 sps:$4 sm:$0xff]  }
  0x8e   :  { %353 = vmatprep.subr.bf16.mxu0 %v1230_v38  ;;  %v1305_v38 = vld [vmem:[#allocation10 + $0x74] ss:$8 sps:$4 sm:$0xff]  }
  0x91   :  { %354 = vmatpush1.bf16.msra.mxu0 %v1232_v39  ;;  %v1303_v39 = vld [vmem:[#allocation10 + $0x70] ss:$8 sps:$4 sm:$0xff]  }
  0x92   :  { %355 = vmatprep.subr.bf16.mxu0 %v1233_v40  ;;  %v1308_v40 = vld [vmem:[#allocation10 + $0x84] ss:$8 sps:$4 sm:$0xff]  }
  0x95   :  { %356 = vmatpush1.bf16.msra.mxu0 %v1235_v41  ;;  %v1306_v41 = vld [vmem:[#allocation10 + $0x80] ss:$8 sps:$4 sm:$0xff]  }
  0x96   :  { %357 = vmatprep.subr.bf16.mxu0 %v1236_v42  ;;  %v1311_v42 = vld [vmem:[#allocation10 + $0x94] ss:$8 sps:$4 sm:$0xff]  }
  0x99   :  { %358 = vmatpush1.bf16.msra.mxu0 %v1238_v43  ;;  %v1309_v43 = vld [vmem:[#allocation10 + $0x90] ss:$8 sps:$4 sm:$0xff]  }
  0x9a   :  { %956 = vmatprep.subr.bf16.mxu0 %v1284_v25 }
  0x9c   :  { %360 = vmatmul.mubr.bf16.vlgmr.msra.gmra.mrb[0].mxu0 %v1239_v44 }
  0x9d   :  { %957 = vmatpush1.bf16.msra.mxu0 %v1282_v24 }
  0x9e   :  { %958 = vmatprep.subr.bf16.mxu0 %v1287_v26 }
  0xa1   :  { %959 = vmatpush1.bf16.msra.mxu0 %v1285_v27 }
  0xa2   :  { %960 = vmatprep.subr.bf16.mxu0 %v1290_v28 }
  0xa5   :  { %961 = vmatpush1.bf16.msra.mxu0 %v1288_v29 }
  0xa6   :  { %962 = vmatprep.subr.bf16.mxu0 %v1293_v30 }
  0xa9   :  { %963 = vmatpush1.bf16.msra.mxu0 %v1291_v31 }
  0xaa   :  { %964 = vmatprep.subr.bf16.mxu0 %v1296_v32 }
  0xad   :  { %965 = vmatpush1.bf16.msra.mxu0 %v1294_v33 }
  0xae   :  { %966 = vmatprep.subr.bf16.mxu0 %v1299_v34 }
  0xb1   :  { %967 = vmatpush1.bf16.msra.mxu0 %v1297_v35 }
  0xb2   :  { %968 = vmatprep.subr.bf16.mxu0 %v1302_v36 }
  0xb5   :  { %969 = vmatpush1.bf16.msra.mxu0 %v1300_v37 }
  0xb6   :  { %970 = vmatprep.subr.bf16.mxu0 %v1305_v38 }
  0xb9   :  { %971 = vmatpush1.bf16.msra.mxu0 %v1303_v39 }
  0xba   :  { %972 = vmatprep.subr.bf16.mxu0 %v1308_v40 }
  0xbd   :  { %973 = vmatpush1.bf16.msra.mxu0 %v1306_v41 }
  0xbe   :  { %974 = vmatprep.subr.bf16.mxu0 %v1311_v42 }
  0xc1   :  { %975 = vmatpush1.bf16.msra.mxu0 %v1309_v43 }
 0x16f   :  { %v361_v58 = vpop.f32.mrb[0].mxu0 }
 0x170   :  { %v362_v59 = vadd.f32 %v361_v58, %v150_v56  ;;  %v363_v60 = vpop.f32.mrb[1].mxu0 }
 0x171   :  { %v364_v61 = vadd.f32 %v363_v60, %v154_v57  ;;  %v365_v62 = vpop.f32.mrb[2].mxu0 }
 0x172   :  { %v366_v63 = vadd.f32 %v365_v62, %v150_v56  ;;  %v367_v0 = vpop.f32.mrb[3].mxu0  ;;  %v370_v2 = vmax.f32 %v362_v59, 0.0 }
 0x173   :  { %v368_v1 = vadd.f32 %v367_v0, %v154_v57  ;;  %v371_v4 = vmax.f32 %v364_v61, 0.0  ;;  %v1106_v61 = vld [vmem:[%s1740_s6] ss:$0 sm:$0xff] }
 0x174   :  { %v372_v3 = vmax.f32 %v366_v63, 0.0  ;;  %v1105_v63 = vld [vmem:[%s1739_s5] ss:$0 sm:$0xff] }
 0x175   :  { %v373_v5 = vmax.f32 %v368_v1, 0.0 }
 0x176   :  { %v374_v6 = vpack.c.bf16 %v372_v3, %v370_v2 }
 0x177   :  { %v375_v7 = vpack.c.bf16 %v373_v5, %v371_v4 }
 0x179   :  { %543 = vmatprep.mubr.bf16.mxu1 %v375_v7 }
 0x17a   :  { %544 = vmatmul.mubr.bf16.vlgmr.msra.gmra.mrb[0].mxu1 %v374_v6 }
 0x17b   :  { %692 = vmatpush1.bf16.msra.mxu1 %v1258_v8  ;;  %723 = vmatprep.mubr.bf16.mxu1 %v1523_v20  ;;  %v1314_v8 = vld [vmem:[#allocation10 + $0xa4] ss:$8 sps:$4 sm:$0xff]   ;;  %v599_v20 = vld [vmem:[%s1742_s8] sm:$0x3]  ;;  %s1524_s8 = smov [#allocation12]  }
 0x17c   :  { %693 = vmatprep.subr.bf16.mxu1 %v1263_v9  ;;  %v1312_v9 = vld [vmem:[#allocation10 + $0xa0] ss:$8 sps:$4 sm:$0xff]   ;;  %976 = vmatprep.subr.bf16.mxu0 %v1314_v8  ;;  %s1036_s30 = sshll.u32 %s1524_s8, 4  ;;  %s1037_s30 = int_to_ptr.vmem [resolvable:$true] %s1036_s30 }
 0x17d   :  { %977 = vmatpush1.bf16.msra.mxu0 %v1312_v9  ;;  %s1460_s19 = scalar_lea.vmem %s1037_s30, 256  ;;  %p1465_p13 = scmp.lt.s32.totalorder %s1037_s30, %s1037_s30 }
 0x17e   :  { %p1461_p12 = scmp.ne.s32.totalorder %s1037_s30, %s1460_s19  ;;  %p1466_p0 = scmp.lt.s32.totalorder %s1460_s19, %s1460_s19 }
 0x17f   :  { %694 = vmatpush1.bf16.msra.mxu1 %v1261_v10  ;;  %v1317_v10 = vld [vmem:[#allocation10 + $0xb4] ss:$8 sps:$4 sm:$0xff]  }
 0x180   :  { %695 = vmatprep.subr.bf16.mxu1 %v1266_v11  ;;  %v1315_v11 = vld [vmem:[#allocation10 + $0xb0] ss:$8 sps:$4 sm:$0xff]   ;;  %978 = vmatprep.subr.bf16.mxu0 %v1317_v10  ;;  %p1467_p1 = por %p1466_p0, %p1465_p13 }
 0x181   :  { %979 = vmatpush1.bf16.msra.mxu0 %v1315_v11 }
 0x182   :  { %p1468_p2 = pnand %p1467_p1, %p1461_p12 }
 0x183   :  { %696 = vmatpush1.bf16.msra.mxu1 %v1264_v12  ;;  %v1320_v12 = vld [vmem:[#allocation10 + $0xc4] ss:$8 sps:$4 sm:$0xff]  }
 0x184   :  { %697 = vmatprep.subr.bf16.mxu1 %v1269_v13  ;;  %v1318_v13 = vld [vmem:[#allocation10 + $0xc0] ss:$8 sps:$4 sm:$0xff]   ;;  %980 = vmatprep.subr.bf16.mxu0 %v1320_v12 }
 0x185   :  { %981 = vmatpush1.bf16.msra.mxu0 %v1318_v13 }
 0x187   :  { %698 = vmatpush1.bf16.msra.mxu1 %v1267_v14  ;;  %v1323_v14 = vld [vmem:[#allocation10 + $0xd4] ss:$8 sps:$4 sm:$0xff]  }
 0x188   :  { %699 = vmatprep.subr.bf16.mxu1 %v1272_v15  ;;  %v1321_v15 = vld [vmem:[#allocation10 + $0xd0] ss:$8 sps:$4 sm:$0xff]   ;;  %982 = vmatprep.subr.bf16.mxu0 %v1323_v14 }
 0x189   :  { %983 = vmatpush1.bf16.msra.mxu0 %v1321_v15 }
 0x18b   :  { %700 = vmatpush1.bf16.msra.mxu1 %v1270_v16  ;;  %v1326_v16 = vld [vmem:[#allocation10 + $0xe4] ss:$8 sps:$4 sm:$0xff]  }
 0x18c   :  { %701 = vmatprep.subr.bf16.mxu1 %v1275_v17  ;;  %v1324_v17 = vld [vmem:[#allocation10 + $0xe0] ss:$8 sps:$4 sm:$0xff]   ;;  %984 = vmatprep.subr.bf16.mxu0 %v1326_v16 }
 0x18d   :  { %985 = vmatpush1.bf16.msra.mxu0 %v1324_v17 }
 0x18f   :  { %702 = vmatpush1.bf16.msra.mxu1 %v1273_v18  ;;  %v1329_v18 = vld [vmem:[#allocation10 + $0xf4] ss:$8 sps:$4 sm:$0xff]  }
 0x190   :  { %703 = vmatprep.subr.bf16.mxu1 %v1278_v19  ;;  %v1327_v19 = vld [vmem:[#allocation10 + $0xf0] ss:$8 sps:$4 sm:$0xff]   ;;  %986 = vmatprep.subr.bf16.mxu0 %v1329_v18 }
 0x191   :  { %987 = vmatpush1.bf16.msra.mxu0 %v1327_v19 }
 0x193   :  { %704 = vmatpush1.bf16.msra.mxu1 %v1276_v21  ;;  %v604_v21 = vrot.slane %v599_v20, %v1679_v53 }
 0x194   :  { %705 = vmatprep.subr.bf16.mxu1 %v1281_v22  ;;  %v608_v22 = vrot.slane %v599_v20, %v1684_v55 }
 0x197   :  { %706 = vmatpush1.bf16.msra.mxu1 %v1279_v23 }
 0x24d   :  { %v1171_v44 = vpop.f32.mrb[0].mxu1 }
 0x24e   :  { %v1172_v46 = vpop.f32.mrb[1].mxu1 }
 0x24f   :  { %v1173_v47 = vadd.f32 %v1172_v46, %v1171_v44  ;;  %v1174_v48 = vpop.f32.mrb[2].mxu1 }
 0x250   :  { %v1175_v49 = vpop.f32.mrb[3].mxu1 }
 0x251   :  { %v546_v50 = vadd.f32 %v1173_v47, %v1088_v45  ;;  %v1176_v51 = vadd.f32 %v1175_v49, %v1174_v48 }
 0x253   :  { %v552_v52 = vmax.f32 %v546_v50, 0.0  ;;  %v549_v54 = vadd.f32 %v1176_v51, %v1088_v45 }
 0x255   :  { %v566_v56 = vmul.f32 0.5, %v552_v52  ;;  %554 = vst [vmem:[#allocation12] sm:$0xff] %v552_v52  ;;  %v553_v57 = vmax.f32 %v549_v54, 0.0  ;;  %v563_v2 = vmul.f32 %v1105_v63, %v552_v52 }
 0x257   :  { %v568_v58 = vmul.f32 1.442695, %v566_v56  ;;  %v567_v59 = vmul.f32 0.5, %v553_v57  ;;  %555 = vst [vmem:[#allocation12 + $0x8] sm:$0xff] %v553_v57  ;;  %v564_v3 = vmul.f32 %v1105_v63, %v553_v57 }
 0x259   :  { %1330 = vpow2.f32 %v568_v58  ;;  %v570_v60 = vmul.f32 1.442695, %v567_v59 }
 0x25b   :  { %1332 = vpow2.f32 %v570_v60 }
 0x263   :  { %v1331_v62 = vpop.eup %1330 }
 0x264   :  { %v578_v0 = vmul.f32 %v1331_v62, %v1106_v61 }
 0x265   :  { %v1333_v1 = vpop.eup %1332 }
 0x266   :  { %v579_v4 = vmul.f32 %v1333_v1, %v1106_v61  ;;  %v580_v5 = vadd.f32 %v578_v0, %v563_v2 }
 0x268   :  { %v581_v6 = vadd.f32 %v579_v4, %v564_v3 }
 0x26a   :  { %v582_v7 = vpack.c.bf16 %v581_v6, %v580_v5 }
 0x26c   :  { %724 = vmatmul.mubr.bf16.vlgmr.msra.gmra.mrb[4].mxu1 %v582_v7 }
 0x33f   :  { %v725_v23 = vpop.f32.mrb[4].mxu1 }
 0x340   :  { %v726_v24 = vadd.f32 %v725_v23, %v604_v21  ;;  %v727_v25 = vpop.f32.mrb[5].mxu1 }
 0x341   :  { %v728_v26 = vadd.f32 %v727_v25, %v608_v22  ;;  %v729_v27 = vpop.f32.mrb[6].mxu1 }
 0x342   :  { %v734_v28 = vmul.f32 0.5, %v726_v24  ;;  %v730_v29 = vadd.f32 %v729_v27, %v604_v21  ;;  %v731_v30 = vpop.f32.mrb[7].mxu1 }
 0x343   :  { %v735_v31 = vmul.f32 0.5, %v728_v26  ;;  %v732_v32 = vadd.f32 %v731_v30, %v608_v22 }
 0x344   :  { %1334 = vtanh.f32 %v734_v28  ;;  %v736_v33 = vmul.f32 0.5, %v730_v29 }
 0x345   :  { %1336 = vtanh.f32 %v735_v31  ;;  %v737_v34 = vmul.f32 0.5, %v732_v32 }
 0x346   :  { %1338 = vtanh.f32 %v736_v33 }
 0x347   :  { %1340 = vtanh.f32 %v737_v34 }
 0x34e   :  { %v1335_v35 = vpop.eup %1334 }
 0x34f   :  { %v1337_v36 = vpop.eup %1336  ;;  %v742_v37 = vadd.f32 1.0, %v1335_v35 }
 0x350   :  { %v1339_v38 = vpop.eup %1338  ;;  %v743_v39 = vadd.f32 1.0, %v1337_v36 }
 0x351   :  { %v1341_v40 = vpop.eup %1340  ;;  %v744_v41 = vadd.f32 1.0, %v1339_v38  ;;  %v746_v43 = vmul.f32 0.5, %v742_v37 }
 0x352   :  { %v745_v42 = vadd.f32 1.0, %v1341_v40  ;;  %v747_v45 = vmul.f32 0.5, %v743_v39 }
 0x353   :  { %v748_v44 = vmul.f32 0.5, %v744_v41 }
 0x354   :  { %v749_v46 = vmul.f32 0.5, %v745_v42 }
 0x355   :  { %v750_v47 = vpack.c.bf16 %v748_v44, %v746_v43 }
 0x356   :  { %v751_v48 = vpack.c.bf16 %v749_v46, %v747_v45 }
 0x358   :  { %988 = vmatprep.mubr.bf16.mxu0 %v751_v48 }
 0x359   :  { %989 = vmatmul.mubr.bf16.vlgmr.msra.gmra.mrb[4].mxu0 %v750_v47 }
 0x35a   :  { %1471 = shalt.err (!%p1468_p2)
}
 0x35b   :  { %s1472_s23 = scalar_lea.hbm %s1746_s12, 256 }
 0x35c   :  { %p1473_p3 = scmp.ne.s32.totalorder %s1746_s12, %s1472_s23  ;;  %p1476_p4 = scmp.lt.u32.totalorder %s1472_s23, %s1746_s12 }
 0x35e   :  { %p1478_p5 = pnand %p1476_p4, %p1473_p3 }
 0x360   :  { %1481 = shalt.err (!%p1478_p5)
}
 0x361   :  { %1042 = dma.vmem_to_hbm [thread:$0]  %s1037_s30, 256, %s1746_s12, [#allocation13], %s1516_s15, %s1516_s15, %s1517_s16  }
 0x362   :  { %v784_v49 = vld [vmem:[%s1744_s10] sm:$0x3]  ;;  %s1525_s10 = smov [#allocation11]  }
 0x363   :  { %v789_v50 = vrot.slane %v784_v49, %v1679_v53  ;;  %v793_v51 = vrot.slane %v784_v49, %v1684_v55  ;;  %s1024_s12 = sshll.u32 %s1525_s10, 4  ;;  %s1025_s12 = int_to_ptr.vmem [resolvable:$true] %s1024_s12 }
 0x364   :  { %s1482_s15 = scalar_lea.vmem %s1025_s12, 512  ;;  %p1487_p7 = scmp.lt.s32.totalorder %s1025_s12, %s1025_s12 }
 0x365   :  { %p1483_p6 = scmp.ne.s32.totalorder %s1025_s12, %s1482_s15  ;;  %p1488_p8 = scmp.lt.s32.totalorder %s1482_s15, %s1482_s15 }
 0x367   :  { %p1489_p9 = por %p1488_p8, %p1487_p7 }
 0x369   :  { %p1490_p10 = pnand %p1489_p9, %p1483_p6 }
 0x42c   :  { %v990_v52 = vpop.f32.mrb[4].mxu0 }
 0x42d   :  { %v991_v54 = vadd.f32 %v990_v52, %v789_v50  ;;  %v992_v56 = vpop.f32.mrb[5].mxu0 }
 0x42e   :  { %v993_v57 = vadd.f32 %v992_v56, %v793_v51  ;;  %v994_v58 = vpop.f32.mrb[6].mxu0 }
 0x42f   :  { %v999_v59 = vmul.f32 0.5, %v991_v54  ;;  %v995_v60 = vadd.f32 %v994_v58, %v789_v50  ;;  %v996_v61 = vpop.f32.mrb[7].mxu0 }
 0x430   :  { %v1000_v62 = vmul.f32 0.5, %v993_v57  ;;  %v997_v63 = vadd.f32 %v996_v61, %v793_v51 }
 0x431   :  { %1342 = vtanh.f32 %v999_v59  ;;  %v1001_v0 = vmul.f32 0.5, %v995_v60 }
 0x432   :  { %1344 = vtanh.f32 %v1000_v62  ;;  %v1002_v1 = vmul.f32 0.5, %v997_v63 }
 0x433   :  { %1346 = vtanh.f32 %v1001_v0 }
 0x434   :  { %1348 = vtanh.f32 %v1002_v1 }
 0x43b   :  { %v1343_v2 = vpop.eup %1342 }
 0x43c   :  { %v1345_v53 = vpop.eup %1344  ;;  %v1007_v3 = vadd.f32 1.0, %v1343_v2 }
 0x43d   :  { %v1347_v55 = vpop.eup %1346  ;;  %v1008_v4 = vadd.f32 1.0, %v1345_v53 }
 0x43e   :  { %v1349_v5 = vpop.eup %1348  ;;  %v1011_v6 = vmul.f32 0.5, %v1007_v3  ;;  %v1009_v7 = vadd.f32 1.0, %v1347_v55 }
 0x43f   :  { %v1012_v8 = vmul.f32 0.5, %v1008_v4  ;;  %v1010_v9 = vadd.f32 1.0, %v1349_v5 }
 0x440   :  { %1015 = vst [vmem:[#allocation11] sm:$0xff] %v1011_v6  ;;  %v1013_v10 = vmul.f32 0.5, %v1009_v7 }
 0x441   :  { %1016 = vst [vmem:[#allocation11 + $0x8] sm:$0xff] %v1012_v8  ;;  %v1014_v11 = vmul.f32 0.5, %v1010_v9 }
 0x442   :  { %1017 = vst [vmem:[#allocation11 + $0x10] sm:$0xff] %v1013_v10 }
 0x443   :  { %1018 = vst [vmem:[#allocation11 + $0x18] sm:$0xff] %v1014_v11 }
 0x444   :  { %1493 = shalt.err (!%p1490_p10)
}
 0x445   :  { %s1494_s14 = scalar_lea.hbm %s1745_s11, 512 }
 0x446   :  { %p1495_p11 = scmp.ne.s32.totalorder %s1745_s11, %s1494_s14  ;;  %p1498_p12 = scmp.lt.u32.totalorder %s1494_s14, %s1745_s11 }
 0x448   :  { %p1500_p13 = pnand %p1498_p12, %p1495_p11 }
 0x44a   :  { %1503 = shalt.err (!%p1500_p13)
}
 0x44b   :  { %s1526_s17 = smov 256   ;;  %s1527_s18 = smov 16  }
 0x44c   :  { %1030 = dma.vmem_to_hbm [thread:$0]  %s1025_s12, 512, %s1745_s11, [#allocation4], %s1526_s17, %s1526_s17, %s1527_s18  }
 0x44d   :  { %1510 = dma.done.wait [#allocation4], 512  }
 0x44e   :  { %1511 = vsyncadd [#allocation4], 4294966784 }
 0x44f   :  { %1512 = dma.done.wait [#allocation13], 256  }
 0x450   :  { %1513 = vsyncadd [#allocation13], 4294967040 }
 0x451   :  { %1049 = vsyncpa [#allocation3], 1 }
 0x452   :  { %1050 = vsyncpa [#allocation6], 1 }
 0x453   :  { %1051 = vsyncpa [#allocation9], 1 }
 0x454   :  { %1052 = vsyncpa [#allocation4], 1 }
 0x455   :  { %1053 = vsyncpa [#allocation13], 1 }

</bundles_post_ra>
